<compile_context>
chip_gen: v7x
topology: tpu7x:2x2x1
jax: 0.10.0
libtpu: 0.0.40
codegen_flags: <defaults>
</compile_context>

<pallas_src>
import functools

import jax
import jax.numpy as jnp
from jax import lax
from jax.experimental import pallas as pl
from jax.experimental.pallas import tpu as pltpu


# Widest lane count that evenly divides n_elem wins -> zero padding and the
# flatten/reshape on input and output are layout-preserving (no extra HBM pass).
_LANE_CANDIDATES = (2048, 1024, 512, 256, 128)
_FALLBACK_LANES = 512

# Weights whose (padded) f32 footprint is below this use the fused
# single-pass, whole-weight-resident kernel.
_FUSED_BYTES = 4 * 1024 * 1024

# Tiled path: ~2 MiB f32 per block (measured ~85% of HBM roofline regime).
_BLOCK_TARGET_ELEMS = 512 * 1024

# Below v7x's 64 MiB physical VMEM; leaves headroom for elementwise temporaries.
_VMEM_LIMIT_BYTES = 48 * 1024 * 1024


def _choose_layout(n_elem):
    """Returns (rows, lanes, pad) for a lane-dense 2-D view of the flat weight."""
    for lanes in _LANE_CANDIDATES:
        if n_elem % lanes == 0:
            return n_elem // lanes, lanes, 0
    lanes = _FALLBACK_LANES
    rows = -(-n_elem // lanes)
    return rows, lanes, rows * lanes - n_elem


def _prep(weight):
    n_elem = weight.size
    rows, lanes, pad = _choose_layout(n_elem)
    w_flat = weight.reshape(-1)
    if pad:
        w_flat = jnp.pad(w_flat, (0, pad))
    return w_flat.reshape(rows, lanes), rows, lanes, pad


def _finish(out2, pad, n_elem, orig_shape):
    flat = out2.reshape(-1)
    if pad:
        flat = flat[:n_elem]
    return flat.reshape(orig_shape)


# ----------------------------- fused (resident) kernels ---------------------

def _fused_binary_kernel(w_ref, o_ref, *, inv_n_valid):
    # E = mean(|w|) over the valid elements; padded zeros don't change the sum.
    w = w_ref[...].astype(jnp.float32)
    e = jnp.sum(jnp.abs(w)) * inv_n_valid
    inv_e = 1.0 / e
    o_ref[...] = (jnp.round(w * inv_e) * e).astype(o_ref.dtype)


def _fused_multibit_kernel(w_ref, o_ref, *, n, n_valid):
    rows, lanes = w_ref.shape
    w = w_ref[...].astype(jnp.float32)
    if n_valid != rows * lanes:
        # Mask padding out of the max (padded zeros could exceed all-negative w).
        flat_idx = (lax.broadcasted_iota(jnp.int32, (rows, lanes), 0) * lanes
                    + lax.broadcasted_iota(jnp.int32, (rows, lanes), 1))
        w_max = jnp.max(jnp.where(flat_idx < n_valid, w, -jnp.inf))
    else:
        w_max = jnp.max(w)
    max_t = jnp.tanh(w_max)          # tanh monotonic: tanh(max(w)) == max(tanh(w))
    s1 = (0.5 * n) / max_t
    t = jnp.tanh(w)
    o_ref[...] = (jnp.round(t * s1 + 0.5 * n) * (2.0 / n) - 1.0).astype(o_ref.dtype)


def _dorefa_fused(weight, num_bits):
    orig_shape = weight.shape
    n_elem = weight.size
    w2, _, _, pad = _prep(weight)

    if num_bits == 1:
        kernel = functools.partial(_fused_binary_kernel, inv_n_valid=1.0 / n_elem)
    else:
        n = float(2.0 ** num_bits - 1)
        kernel = functools.partial(_fused_multibit_kernel, n=n, n_valid=n_elem)

    out2 = pl.pallas_call(
        kernel,
        out_shape=jax.ShapeDtypeStruct(w2.shape, weight.dtype),
        in_specs=[pl.BlockSpec(memory_space=pltpu.MemorySpace.VMEM)],
        out_specs=pl.BlockSpec(memory_space=pltpu.MemorySpace.VMEM),
        compiler_params=pltpu.CompilerParams(vmem_limit_bytes=_VMEM_LIMIT_BYTES),
    )(w2)
    return _finish(out2, pad, n_elem, orig_shape)


# ----------------------------- tiled (streaming) kernels --------------------

def _tiled_binary_kernel(s_ref, w_ref, o_ref):
    # s_ref = [1/E, E] in SMEM; pure VPU multiplies per element.
    w = w_ref[...].astype(jnp.float32)
    o_ref[...] = (jnp.round(w * s_ref[0]) * s_ref[1]).astype(o_ref.dtype)


def _tiled_multibit_kernel(s_ref, w_ref, o_ref, *, two_over_n):
    # s_ref = [0.5*n/max_t, 0.5*n]; qw = round(tanh(w)*s1 + s2)*(2/n) - 1.
    t = jnp.tanh(w_ref[...].astype(jnp.float32))
    o_ref[...] = (jnp.round(t * s_ref[0] + s_ref[1]) * two_over_n
                  - 1.0).astype(o_ref.dtype)


def _dorefa_tiled(weight, num_bits, block_rows=None):
    orig_shape = weight.shape
    n_elem = weight.size

    # Global scalar(s): tiny XLA reduce on the original weight (no padding,
    # no full-tensor tanh — tanh is monotonic so tanh(max(w)) == max(tanh(w))).
    w_f32 = weight.astype(jnp.float32)
    if num_bits == 1:
        e = jnp.mean(jnp.abs(w_f32))
        scalars = jnp.stack([1.0 / e, e]).astype(jnp.float32)
        kernel = _tiled_binary_kernel
    else:
        n = float(2.0 ** num_bits - 1)
        max_t = jnp.tanh(jnp.max(w_f32))
        scalars = jnp.stack([(0.5 * n) / max_t,
                             jnp.full((), 0.5 * n, jnp.float32)]).astype(jnp.float32)
        kernel = functools.partial(_tiled_multibit_kernel, two_over_n=2.0 / n)

    w2, rows, lanes, pad = _prep(weight)

    if block_rows is None:
        block_rows = max(8, (_BLOCK_TARGET_ELEMS // lanes) // 8 * 8)
    block_rows = max(8, -(-block_rows // 8) * 8)          # multiple of 8
    block_rows = min(block_rows, -(-rows // 8) * 8)       # no point exceeding rows
    grid = pl.cdiv(rows, block_rows)                      # ragged tail is masked

    out2 = pl.pallas_call(
        kernel,
        out_shape=jax.ShapeDtypeStruct(w2.shape, weight.dtype),
        grid_spec=pl.GridSpec(
            grid=(grid,),
            in_specs=[
                pl.BlockSpec(memory_space=pltpu.MemorySpace.SMEM),    # scalars
                pl.BlockSpec((block_rows, lanes), lambda i: (i, 0)),
            ],
            out_specs=pl.BlockSpec((block_rows, lanes), lambda i: (i, 0)),
        ),
        compiler_params=pltpu.CompilerParams(
            dimension_semantics=("parallel",),
            vmem_limit_bytes=_VMEM_LIMIT_BYTES),
    )(scalars, w2)
    return _finish(out2, pad, n_elem, orig_shape)


# ----------------------------- public entry point ---------------------------

def dorefa_weight(weight, num_bits):
    """Pallas implementation of dorefa_weight(num_bits).forward(weight)."""
    if num_bits == 32:
        return weight
    rows, lanes, _ = _choose_layout(weight.size)
    if rows * lanes * 4 <= _FUSED_BYTES:
        return _dorefa_fused(weight, num_bits)      # one HBM read total
    return _dorefa_tiled(weight, num_bits)          # two-pass, streaming


# ----------------------------- verification ---------------------------------

def _reference(weight, num_bits):
    """Pure-JAX reference mirroring the PyTorch forward."""
    if num_bits == 32:
        return weight
    if num_bits == 1:
        e = jnp.mean(jnp.abs(weight))
        return jnp.round(weight / e) * e
    n = float(2.0 ** num_bits - 1)
    w = jnp.tanh(weight)
    w = w / 2.0 / jnp.max(w) + 0.5
    return 2.0 * (jnp.round(w * n) / n) - 1.0


if __name__ == "__main__":
    key = jax.random.PRNGKey(0)
    k1, k2 = jax.random.split(key)
    weights = [
        jax.random.normal(k1, (8, 4, 3, 3), dtype=jnp.float32),      # padded fallback
        jax.random.normal(k2, (128, 128, 3, 3), dtype=jnp.float32),  # zero-pad layout
    ]

    # Public API (fused, whole-weight-resident path for these sizes).
    for w in weights:
        for num_bits in (1, 2, 4, 32):
            qw = jax.block_until_ready(dorefa_weight(w, num_bits))
            ref = _reference(w, num_bits)
            if qw.shape != w.shape or qw.dtype != w.dtype:
                raise AssertionError(
                    f"shape/dtype mismatch for shape={w.shape}, num_bits={num_bits}")
            if not jnp.allclose(qw, ref, atol=1e-5, rtol=1e-5):
                raise AssertionError(
                    f"value mismatch for shape={w.shape}, num_bits={num_bits}")

    # Also exercise the large-weight two-pass tiled path (multi-block grid with
    # a ragged tail block) at a small size by forcing a small block.
    w = weights[1]
    for num_bits in (1, 3):
        qw = jax.block_until_ready(_dorefa_tiled(w, num_bits, block_rows=16))
        ref = _reference(w, num_bits)
        if not jnp.allclose(qw, ref, atol=1e-5, rtol=1e-5):
            raise AssertionError(
                f"tiled-path mismatch for shape={w.shape}, num_bits={num_bits}")

    print("KERNEL_OK")
</pallas_src>

<mosaic_0001>
module attributes {stable_mosaic.version = 11 : i64} {
  func.func @_fused_binary_kernel(%arg0: memref<1x512xf32, #tpu.memory_space<vmem>>, %arg1: memref<1x512xf32, #tpu.memory_space<vmem>>) attributes {dimension_semantics = [], scalar_prefetch = 0 : i64, scratch_operands = 0 : i64, tpu.core_type = #tpu.core_type<tc>} {
    %c0 = arith.constant 0 : index
    %c0_0 = arith.constant 0 : index
    %0 = vector.load %arg0[%c0, %c0_0] : memref<1x512xf32, #tpu.memory_space<vmem>>, vector<1x512xf32>
    %1 = math.absf %0 : vector<1x512xf32>
    %2 = vector.shape_cast %1 : vector<1x512xf32> to vector<1x1x512xf32>
    %cst = arith.constant dense<0.000000e+00> : vector<1xf32>
    %3 = vector.multi_reduction <add>, %2, %cst [1, 2] : vector<1x1x512xf32> to vector<1xf32>
    %4 = vector.shape_cast %3 : vector<1xf32> to vector<1x1x1xf32>
    %5 = vector.extract %4[0, 0, 0] : f32 from vector<1x1x1xf32>
    %cst_1 = arith.constant 0.00347222225 : f32
    %6 = arith.mulf %5, %cst_1 : f32
    %cst_2 = arith.constant 1.000000e+00 : f32
    %7 = arith.divf %cst_2, %6 : f32
    %8 = vector.broadcast %7 : f32 to vector<1x512xf32>
    %9 = arith.mulf %0, %8 : vector<1x512xf32>
    %10 = math.roundeven %9 : vector<1x512xf32>
    %11 = vector.broadcast %6 : f32 to vector<1x512xf32>
    %12 = arith.mulf %10, %11 : vector<1x512xf32>
    %c0_3 = arith.constant 0 : index
    %c0_4 = arith.constant 0 : index
    %13 = vector.load %arg1[%c0_3, %c0_4] : memref<1x512xf32, #tpu.memory_space<vmem>>, vector<1x512xf32>
    tpu.vector_store %arg1[%c0_3, %c0_4], %12 {strides = array<i32>} : memref<1x512xf32, #tpu.memory_space<vmem>>, vector<1x512xf32>,
    return
  }
}

</mosaic_0001>

<bundles_post_ra>
// kernel: tpu_custom_call.1
= control target key start
LH: loop header
LB: loop body
LE: loop exit
PB: predicated region body
PF: predicated region fallthrough
CT: control target
= control target key end

     0   :  { %6 = vsyncpa [#allocation3], 0  ;;  %s183_s0 = inlined_call_operand.hbm [shape: f32[1,512], index: 0, kind: input, shape index: {}]   ;;  %s184_s1 = inlined_call_operand.hbm [shape: f32[1,512], index: 1, kind: output, shape index: {}]  }
   0x1   :  { %7 = vsyncpa [#allocation4], 0  ;;  %s147_s6 = smov [#allocation2]   ;;  %s99_s10 = scalar_lea.hbm %s183_s0, 64 }
   0x2   :  { %s14_s7 = sshll.u32 %s147_s6, 4  ;;  %p100_p0 = scmp.ne.s32.totalorder %s183_s0, %s99_s10  ;;  %s15_s7 = int_to_ptr.vmem [resolvable:$true] %s14_s7 }
   0x3   :  { %p103_p1 = scmp.lt.u32.totalorder %s99_s10, %s183_s0 }
   0x5   :  { %p105_p2 = pnand %p103_p1, %p100_p0 }
   0x7   :  { %108 = shalt.err (!%p105_p2)
}
   0x8   :  { %s109_s15 = scalar_lea.vmem %s15_s7, 64  ;;  %p114_p4 = scmp.lt.s32.totalorder %s15_s7, %s15_s7 }
   0x9   :  { %p110_p3 = scmp.ne.s32.totalorder %s15_s7, %s109_s15  ;;  %p115_p5 = scmp.lt.s32.totalorder %s109_s15, %s109_s15 }
   0xb   :  { %p116_p6 = por %p115_p5, %p114_p4 }
   0xd   :  { %p117_p7 = pnand %p116_p6, %p110_p3 }
   0xf   :  { %120 = shalt.err (!%p117_p7)
}
  0x10   :  { %17 = dma.hbm_to_vmem [thread:$0]  %s183_s0, 64, %s15_s7, [#allocation3]  }
  0x11   :  { %143 = dma.done.wait [#allocation3], 64  }
  0x12   :  { %144 = vsyncadd [#allocation3], 4294967232  ;;  %v24_v0 = vlaneseq  ;;  %v21_v6 = vld [vmem:[#allocation2] sm:$0xf]  ;;  %vm44_vm0 = vcmask 1040384   ;;  %s148_s20 = smov [#allocation5]  }
  0x13   :  { %v22_v7 = vand.u32 2147483647, %v21_v6  ;;  %s81_s21 = sshll.u32 %s148_s20, 4  ;;  %s82_s21 = int_to_ptr.vmem [resolvable:$true] %s81_s21 }
  0x14   :  { %v25_v1 = vshrl.u32 %v24_v0, 7  ;;  %vm72_vm1 = vcmp.lt.s32.totalorder %v24_v0, 512  ;;  %s121_s22 = scalar_lea.vmem %s82_s21, 64  ;;  %p126_p9 = scmp.lt.s32.totalorder %s82_s21, %s82_s21 }
  0x15   :  { %p122_p8 = scmp.ne.s32.totalorder %s82_s21, %s121_s22  ;;  %p127_p10 = scmp.lt.s32.totalorder %s121_s22, %s121_s22 }
  0x16   :  { %v26_v2 = vsub.s32 0, %v25_v1  ;;  %v30_v3 = vsub.s32 1, %v25_v1  ;;  %v34_v4 = vsub.s32 2, %v25_v1  ;;  %v38_v5 = vsub.s32 3, %v25_v1 }
  0x17   :  { %p128_p11 = por %p127_p10, %p126_p9 }
  0x18   :  { %v27_v8 = vrot.slane %v22_v7, %v26_v2  ;;  %v31_v9 = vrot.slane %v22_v7, %v30_v3  ;;  %v35_v10 = vrot.slane %v22_v7, %v34_v4  ;;  %v39_v11 = vrot.slane %v22_v7, %v38_v5 }
  0x19   :  { %p129_p12 = pnand %p128_p11, %p122_p8 }
  0x1a   :  { %v45_v12 = vsel %vm44_vm0, %v27_v8, 0.0  ;;  %v46_v13 = vsel %vm44_vm0, %v31_v9, 0.0  ;;  %v48_v14 = vsel %vm44_vm0, %v35_v10, 0.0  ;;  %v50_v16 = vsel %vm44_vm0, %v39_v11, 0.0 }
  0x1b   :  { %v47_v15 = vadd.f32 %v46_v13, %v45_v12 }
  0x1d   :  { %v49_v17 = vadd.f32 %v48_v14, %v47_v15 }
  0x1f   :  { %v51_v18 = vadd.f32 %v50_v16, %v49_v17 }
  0x21   :  { %52 = vadd.xlane.f32.xlu0 %v51_v18 }
  0xae   :  { %v53_v19 = vpop.xlane.xlu0 %52 }
  0xaf   :  { %v54_v20 = vrot.slane %v53_v19, 4 }
  0xb1   :  { %v55_v21 = vadd.f32 %v54_v20, %v53_v19 }
  0xb3   :  { %v56_v22 = vrot.slane %v55_v21, 2 }
  0xb5   :  { %v57_v23 = vadd.f32 %v56_v22, %v55_v21 }
  0xb7   :  { %v58_v24 = vrot.slane %v57_v23, 1 }
  0xb9   :  { %v59_v25 = vadd.f32 %v58_v24, %v57_v23 }
  0xbb   :  { %90 = vpush %v59_v25 }
  0xec   :  { %s91_s0 = spop %90 }
  0xed   :  { %s61_s18 = smul.f32 0.0034722222, %s91_s0 }
  0xef   :  { %v62_v26 = vstv %s61_s18 }
  0xf0   :  { %97 = vrcp.f32 %v62_v26 }
  0xfa   :  { %v98_v27 = vpop.eup %97 }
  0xfb   :  { %92 = vpush %v98_v27 }
 0x12c   :  { %s93_s19 = spop %92 }
 0x12d   :  { %v65_v28 = vstv %s93_s19 }
 0x12e   :  { %v66_v29 = vmul.f32 %v65_v28, %v21_v6 }
 0x130   :  { %v94_v30 = vround.rtne.f32 %v66_v29 }
 0x132   :  { %v69_v31 = vmul.f32 %v94_v30, %v62_v26 }
 0x134   :  { %74 = vst.msk [vmem:[#allocation5] sm:$0xf] %vm72_vm1, %v69_v31 }
 0x135   :  { %132 = shalt.err (!%p129_p12)
}
 0x136   :  { %s133_s25 = scalar_lea.hbm %s184_s1, 64 }
 0x137   :  { %p134_p13 = scmp.ne.s32.totalorder %s184_s1, %s133_s25  ;;  %p137_p0 = scmp.lt.u32.totalorder %s133_s25, %s184_s1 }
 0x139   :  { %p139_p1 = pnand %p137_p0, %p134_p13 }
 0x13b   :  { %142 = shalt.err (!%p139_p1)
}
 0x13c   :  { %84 = dma.vmem_to_hbm [thread:$0]  %s82_s21, 64, %s184_s1, [#allocation4]  }
 0x13d   :  { %145 = dma.done.wait [#allocation4], 64  }
 0x13e   :  { %146 = vsyncadd [#allocation4], 4294967232 }
 0x13f   :  { %88 = vsyncpa [#allocation3], 1 }
 0x140   :  { %89 = vsyncpa [#allocation4], 1 }

</bundles_post_ra>
